<compile_context>
chip_gen: v7x
topology: tpu7x:2x2x1
jax: 0.10.0
libtpu: 0.0.40
codegen_flags: <defaults>
</compile_context>

<pallas_src>
import functools

import jax
import jax.numpy as jnp
from jax import lax
from jax.experimental import pallas as pl
from jax.experimental.pallas import tpu as pltpu

_LANE = 128
_SUBLANE = 8


def _only_image_cls_kernel(x_ref, w1_ref, b1_ref, w2_ref, b2_ref, out_ref,
                           acc_ref, *, inv_hw, hw, ths):
    # x_ref  : [C, ths]  (native dtype image tile, spatial on the lane axis)
    # w1_ref : [C, Dp]  f32, b1_ref: [1, Dp] f32
    # w2_ref : [Dp, Kp] f32, b2_ref: [1, Kp] f32
    # out_ref: [1, Kp]  f32
    # acc_ref: [C, 128] f32 scratch — lane-dense partial spatial sums
    s = pl.program_id(1)

    @pl.when(s == 0)
    def _():
        acc_ref[...] = jnp.zeros_like(acc_ref)

    # Upcast per tile (f32 accumulation everywhere; v5e has no bf16 VPU).
    xf = x_ref[...].astype(jnp.float32)                       # [C, ths]

    if hw % ths != 0:
        # Non-divisible HW: zero the out-of-range tail of the last tile.
        start = s * ths
        col = lax.broadcasted_iota(jnp.int32, xf.shape, 1)
        xf = jnp.where(col < (hw - start), xf, 0.0)

    # Deferred reduction: VALU adds of aligned 128-lane chunks; the single
    # XLU cross-lane reduce happens only in the epilogue.
    n_full, rem = divmod(ths, _LANE)
    if n_full:
        part = xf[:, :_LANE]
        for i in range(1, n_full):
            part = part + xf[:, i * _LANE:(i + 1) * _LANE]
        acc_ref[...] += part
    if rem:
        acc_ref[:, :rem] += xf[:, n_full * _LANE:]

    @pl.when(s == pl.num_programs(1) - 1)
    def _():
        # Global average pool over the ORIGINAL spatial size.
        pooled = jnp.sum(acc_ref[...], axis=-1, keepdims=True) * inv_hw   # [C, 1]
        # First layer: contraction over tiny C via broadcast-mul + sublane
        # reduce (C≈4 would badly underfill the MXU anyway).
        h = jnp.sum(pooled * w1_ref[...], axis=0, keepdims=True) + b1_ref[...]
        h = jnp.maximum(h, 0.0)                                           # [1, Dp]
        # TODO(synk): a real tokenizer/text-encoder has no Pallas equivalent;
        # null text ('') reduces to a zero embedding (a no-op), so it is dropped.
        out_ref[...] = jnp.dot(h, w2_ref[...],
                               preferred_element_type=jnp.float32) + b2_ref[...]


def only_image_cls(images_nchw, params):
    """Forward pass of OnlyImageCls: classify images with a null-text branch."""
    B, C, H, W = images_nchw.shape
    HW = H * W
    w1, b1, w2, b2 = params["w1"], params["b1"], params["w2"], params["b2"]
    D = w1.shape[1]
    K = w2.shape[1]

    # --- lane-dense zero-padding of the TINY weights only (math stays exact) ---
    Dp = -(-D // _LANE) * _LANE
    Kp = -(-K // _LANE) * _LANE
    w1p = jnp.pad(w1.astype(jnp.float32), ((0, 0), (0, Dp - D)))
    b1p = jnp.pad(b1.astype(jnp.float32).reshape(1, D), ((0, 0), (0, Dp - D)))
    w2p = jnp.pad(w2.astype(jnp.float32), ((0, Dp - D), (0, Kp - K)))
    b2p = jnp.pad(b2.astype(jnp.float32).reshape(1, K), ((0, 0), (0, Kp - K)))

    # --- image stream: NCHW -> [B, C, HW] view; native dtype, no cast, no pad ---
    x = images_nchw.reshape(B, C, HW)
    itemsize = jnp.dtype(x.dtype).itemsize

    # --- spatial tile, with sublane padding of C accounted in the budget ---
    sub = _SUBLANE * max(1, 4 // itemsize)          # 8 (f32) / 16 (bf16) / 32 (i8)
    c_pad = -(-C // sub) * sub                      # real VMEM rows per block
    X_BUF_BUDGET = 8 * 1024 * 1024                  # bytes per pipeline buffer
    max_ths = max(_LANE, (X_BUF_BUDGET // (c_pad * itemsize)) // _LANE * _LANE)
    if HW <= max_ths:
        ths = HW                                    # full-extent spatial block
    else:
        ths = 0
        for k in range(max_ths // _LANE, 0, -1):    # largest 128-multiple divisor
            if HW % (k * _LANE) == 0:
                ths = k * _LANE
                break
        if ths == 0:
            ths = max_ths                           # tail masked in-kernel
    n_s = -(-HW // ths)

    grid = (B, n_s)                                 # >= 2 batch tiles when B >= 2
    kernel = functools.partial(_only_image_cls_kernel,
                               inv_hw=1.0 / HW, hw=HW, ths=ths)

    out = pl.pallas_call(
        kernel,
        out_shape=jax.ShapeDtypeStruct((B, 1, Kp), jnp.float32),
        grid_spec=pltpu.PrefetchScalarGridSpec(
            num_scalar_prefetch=0,
            grid=grid,
            in_specs=[
                # streamed image tiles (double-buffered by the pipeline)
                pl.BlockSpec((None, C, ths), lambda b, s: (b, 0, s)),
                # tiny weights/biases: constant index_map -> VMEM resident
                pl.BlockSpec((C, Dp), lambda b, s: (0, 0)),
                pl.BlockSpec((1, Dp), lambda b, s: (0, 0)),
                pl.BlockSpec((Dp, Kp), lambda b, s: (0, 0)),
                pl.BlockSpec((1, Kp), lambda b, s: (0, 0)),
            ],
            out_specs=pl.BlockSpec((None, 1, Kp), lambda b, s: (b, 0, 0)),
            scratch_shapes=[pltpu.VMEM((C, _LANE), jnp.float32)],
        ),
        compiler_params=pltpu.CompilerParams(
            dimension_semantics=("parallel", "arbitrary"),
            vmem_limit_bytes=32 * 1024 * 1024,
        ),
    )(x, w1p, b1p, w2p, b2p)

    # Drop the lane padding of the class dim.
    return out.reshape(B, Kp)[:, :K]


def init_params(key, C, D, K):
    k1, k2 = jax.random.split(key)
    w1 = jax.random.normal(k1, (C, D), jnp.float32) * 0.1
    b1 = jnp.zeros((1, D), jnp.float32)
    w2 = jax.random.normal(k2, (D, K), jnp.float32) * 0.1
    b2 = jnp.zeros((1, K), jnp.float32)
    return {"w1": w1, "b1": b1, "w2": w2, "b2": b2}


if __name__ == "__main__":
    key = jax.random.PRNGKey(0)
    k_img, k_par = jax.random.split(key)

    B, C, H, W = 2, 4, 16, 16   # small NCHW image batch
    D, K = 32, 8                # hidden dim, num classes

    images = jax.random.normal(k_img, (B, C, H, W), jnp.float32)
    params = init_params(k_par, C, D, K)

    pred = jax.block_until_ready(only_image_cls(images, params))

    # Pure-JAX reference of the same synthetic classifier (f32 end to end —
    # the kernel no longer quantizes the input stream).
    pooled_ref = jnp.mean(images.reshape(B, C, H * W), axis=-1)
    h_ref = jnp.maximum(pooled_ref @ params["w1"] + params["b1"], 0.0)
    ref = h_ref @ params["w2"] + params["b2"]

    assert pred.shape == (B, K), f"bad output shape {pred.shape}"
    assert jnp.allclose(pred, ref, atol=1e-4, rtol=1e-4), "mismatch vs reference"

    print("KERNEL_OK")
</pallas_src>

<mosaic_0001>
module attributes {stable_mosaic.version = 11 : i64} {
  func.func @_only_image_cls_kernel(%arg0: i32, %arg1: i32, %arg2: memref<1x4x256xf32, #tpu.memory_space<vmem>>, %arg3: memref<4x128xf32, #tpu.memory_space<vmem>>, %arg4: memref<1x128xf32, #tpu.memory_space<vmem>>, %arg5: memref<128x128xf32, #tpu.memory_space<vmem>>, %arg6: memref<1x128xf32, #tpu.memory_space<vmem>>, %arg7: memref<1x1x128xf32, #tpu.memory_space<vmem>>, %arg8: memref<4x128xf32, #tpu.memory_space<vmem>>) attributes {dimension_semantics = [#tpu.dimension_semantics<parallel>, #tpu.dimension_semantics<arbitrary>], iteration_bounds = array<i64: 2, 1>, scalar_prefetch = 0 : i64, scratch_operands = 1 : i64, tpu.core_type = #tpu.core_type<tc>, window_params = [{transform_indices = @transform_0, window_bounds = array<i64: 1, 4, 256>}, {pipeline_mode = #tpu.pipeline_mode<synchronous>, transform_indices = @transform_1, window_bounds = array<i64: 4, 128>}, {pipeline_mode = #tpu.pipeline_mode<synchronous>, transform_indices = @transform_2, window_bounds = array<i64: 1, 128>}, {pipeline_mode = #tpu.pipeline_mode<synchronous>, transform_indices = @transform_3, window_bounds = array<i64: 128, 128>}, {pipeline_mode = #tpu.pipeline_mode<synchronous>, transform_indices = @transform_4, window_bounds = array<i64: 1, 128>}, {transform_indices = @transform_5, window_bounds = array<i64: 1, 1, 128>}]} {
    %c0_i32 = arith.constant 0 : i32
    %0 = arith.cmpi eq, %arg1, %c0_i32 : i32
    %1 = arith.extui %0 : i1 to i32
    %c0_i32_0 = arith.constant 0 : i32
    %2 = arith.cmpi ne, %1, %c0_i32_0 : i32
    scf.if %2 {
      %cst = arith.constant 0.000000e+00 : f32
      %14 = vector.broadcast %cst : f32 to vector<4x128xf32>
      %c0_9 = arith.constant 0 : index
      %c0_10 = arith.constant 0 : index
      %15 = vector.load %arg8[%c0_9, %c0_10] : memref<4x128xf32, #tpu.memory_space<vmem>>, vector<4x128xf32>
      tpu.vector_store %arg8[%c0_9, %c0_10], %14 {strides = array<i32>} : memref<4x128xf32, #tpu.memory_space<vmem>>, vector<4x128xf32>,
    } else {
    }
    %c0 = arith.constant 0 : index
    %c0_1 = arith.constant 0 : index
    %c0_2 = arith.constant 0 : index
    %3 = vector.load %arg2[%c0, %c0_1, %c0_2] : memref<1x4x256xf32, #tpu.memory_space<vmem>>, vector<1x4x256xf32>
    %4 = vector.shape_cast %3 : vector<1x4x256xf32> to vector<4x256xf32>
    %5 = vector.extract_strided_slice %4 {offsets = [0, 0], sizes = [4, 128], strides = [1, 1]} : vector<4x256xf32> to vector<4x128xf32>
    %6 = vector.extract_strided_slice %4 {offsets = [0, 128], sizes = [4, 128], strides = [1, 1]} : vector<4x256xf32> to vector<4x128xf32>
    %7 = arith.addf %5, %6 : vector<4x128xf32>
    %c0_3 = arith.constant 0 : index
    %c0_4 = arith.constant 0 : index
    %8 = vector.load %arg8[%c0_3, %c0_4] : memref<4x128xf32, #tpu.memory_space<vmem>>, vector<4x128xf32>
    %9 = arith.addf %8, %7 : vector<4x128xf32>
    %c0_5 = arith.constant 0 : index
    %c0_6 = arith.constant 0 : index
    %10 = vector.load %arg8[%c0_5, %c0_6] : memref<4x128xf32, #tpu.memory_space<vmem>>, vector<4x128xf32>
    tpu.vector_store %arg8[%c0_5, %c0_6], %9 {strides = array<i32>} : memref<4x128xf32, #tpu.memory_space<vmem>>, vector<4x128xf32>,
    %c0_i32_7 = arith.constant 0 : i32
    %11 = arith.cmpi eq, %arg1, %c0_i32_7 : i32
    %12 = arith.extui %11 : i1 to i32
    %c0_i32_8 = arith.constant 0 : i32
    %13 = arith.cmpi ne, %12, %c0_i32_8 : i32
    scf.if %13 {
      %c0_9 = arith.constant 0 : index
      %c0_10 = arith.constant 0 : index
      %14 = vector.load %arg8[%c0_9, %c0_10] : memref<4x128xf32, #tpu.memory_space<vmem>>, vector<4x128xf32>
      %cst = arith.constant dense<0.000000e+00> : vector<4xf32>
      %15 = vector.multi_reduction <add>, %14, %cst [1] : vector<4x128xf32> to vector<4xf32>
      %16 = vector.shape_cast %15 : vector<4xf32> to vector<4x1xf32>
      %cst_11 = arith.constant 3.906250e-03 : f32
      %17 = vector.broadcast %cst_11 : f32 to vector<4x1xf32>
      %18 = arith.mulf %16, %17 : vector<4x1xf32>
      %c0_12 = arith.constant 0 : index
      %c0_13 = arith.constant 0 : index
      %19 = vector.load %arg3[%c0_12, %c0_13] : memref<4x128xf32, #tpu.memory_space<vmem>>, vector<4x128xf32>
      %20 = vector.broadcast %18 : vector<4x1xf32> to vector<4x128xf32>
      %21 = arith.mulf %20, %19 : vector<4x128xf32>
      %cst_14 = arith.constant dense<0.000000e+00> : vector<128xf32>
      %22 = vector.multi_reduction <add>, %21, %cst_14 [0] : vector<4x128xf32> to vector<128xf32>
      %23 = vector.shape_cast %22 : vector<128xf32> to vector<1x128xf32>
      %c0_15 = arith.constant 0 : index
      %c0_16 = arith.constant 0 : index
      %24 = vector.load %arg4[%c0_15, %c0_16] : memref<1x128xf32, #tpu.memory_space<vmem>>, vector<1x128xf32>
      %25 = arith.addf %23, %24 : vector<1x128xf32>
      %cst_17 = arith.constant 0.000000e+00 : f32
      %26 = vector.broadcast %cst_17 : f32 to vector<1x128xf32>
      %27 = arith.maximumf %25, %26 : vector<1x128xf32>
      %c0_18 = arith.constant 0 : index
      %c0_19 = arith.constant 0 : index
      %28 = vector.load %arg5[%c0_18, %c0_19] : memref<128x128xf32, #tpu.memory_space<vmem>>, vector<128x128xf32>
      %cst_20 = arith.constant dense<0.000000e+00> : vector<1x128xf32>
      %29 = tpu.matmul %27, %28, %cst_20 {dimension_numbers = #tpu.dot_dimension_numbers<[1], [0], [0], [1], [0, 0, 1, 1], [], []>} : vector<1x128xf32>, vector<128x128xf32>, vector<1x128xf32> -> vector<1x128xf32>
      %c0_21 = arith.constant 0 : index
      %c0_22 = arith.constant 0 : index
      %30 = vector.load %arg6[%c0_21, %c0_22] : memref<1x128xf32, #tpu.memory_space<vmem>>, vector<1x128xf32>
      %31 = arith.addf %29, %30 : vector<1x128xf32>
      %c0_23 = arith.constant 0 : index
      %c0_24 = arith.constant 0 : index
      %c0_25 = arith.constant 0 : index
      %32 = vector.load %arg7[%c0_23, %c0_24, %c0_25] : memref<1x1x128xf32, #tpu.memory_space<vmem>>, vector<1x1x128xf32>
      %33 = vector.shape_cast %32 : vector<1x1x128xf32> to vector<1x128xf32>
      %34 = vector.shape_cast %31 : vector<1x128xf32> to vector<1x1x128xf32>
      tpu.vector_store %arg7[%c0_23, %c0_24, %c0_25], %34 {strides = array<i32>} : memref<1x1x128xf32, #tpu.memory_space<vmem>>, vector<1x1x128xf32>,
    } else {
    }
    return
  }
  func.func @transform_0(%arg0: i32, %arg1: i32) -> (i32, i32, i32) {
    %c0_i32 = arith.constant 0 : i32
    %c0_i32_0 = arith.constant 0 : i32
    return %arg0, %c0_i32, %arg1 : i32, i32, i32
  }
  func.func @transform_1(%arg0: i32, %arg1: i32) -> (i32, i32) {
    %c0_i32 = arith.constant 0 : i32
    %c0_i32_0 = arith.constant 0 : i32
    %c0_i32_1 = arith.constant 0 : i32
    return %c0_i32, %c0_i32_0 : i32, i32
  }
  func.func @transform_2(%arg0: i32, %arg1: i32) -> (i32, i32) {
    %c0_i32 = arith.constant 0 : i32
    %c0_i32_0 = arith.constant 0 : i32
    %c0_i32_1 = arith.constant 0 : i32
    return %c0_i32, %c0_i32_0 : i32, i32
  }
  func.func @transform_3(%arg0: i32, %arg1: i32) -> (i32, i32) {
    %c0_i32 = arith.constant 0 : i32
    %c0_i32_0 = arith.constant 0 : i32
    %c0_i32_1 = arith.constant 0 : i32
    return %c0_i32, %c0_i32_0 : i32, i32
  }
  func.func @transform_4(%arg0: i32, %arg1: i32) -> (i32, i32) {
    %c0_i32 = arith.constant 0 : i32
    %c0_i32_0 = arith.constant 0 : i32
    %c0_i32_1 = arith.constant 0 : i32
    return %c0_i32, %c0_i32_0 : i32, i32
  }
  func.func @transform_5(%arg0: i32, %arg1: i32) -> (i32, i32, i32) {
    %c0_i32 = arith.constant 0 : i32
    %c0_i32_0 = arith.constant 0 : i32
    %c0_i32_1 = arith.constant 0 : i32
    return %arg0, %c0_i32, %c0_i32_0 : i32, i32, i32
  }
}

</mosaic_0001>

<bundles_post_ra>
// kernel: tpu_custom_call.1
= control target key start
LH: loop header
LB: loop body
LE: loop exit
PB: predicated region body
PF: predicated region fallthrough
CT: control target
= control target key end

     0   :  { %10 = vsyncpa [#allocation4], 0  ;;  %s1161_s0 = inlined_call_operand.hbm [shape: f32[2,4,256], index: 0, kind: input, shape index: {}]   ;;  %s1162_s1 = inlined_call_operand.hbm [shape: f32[4,128], index: 1, kind: input, shape index: {}]   ;;  %s1163_s2 = inlined_call_operand.vmem [shape: f32[1,128], index: 2, kind: input, shape index: {}]   ;;  %s1164_s3 = inlined_call_operand.hbm [shape: f32[128,128], index: 3, kind: input, shape index: {}]   ;;  %s1165_s4 = inlined_call_operand.vmem [shape: f32[1,128], index: 4, kind: input, shape index: {}]   ;;  %s1166_s5 = inlined_call_operand.hbm [shape: f32[2,1,128], index: 5, kind: output, shape index: {}]  }
   0x1   :  { %12 = vsyncpa [#allocation4 + $0x1], 0 }
   0x2   :  { %13 = vsyncpa [#allocation7], 0 }
   0x3   :  { %14 = vsyncpa [#allocation5], 0 }
   0x4   :  { %16 = vsyncpa [#allocation5 + $0x1], 0  ;;  %s909_s18 = smov 0   ;;  %s911_s19 = smov 0  }
   0x5   :  { %s913_s20 = smov 0   ;;  %s915_s21 = smov 0  }
   0x6   :  { %s917_s22 = smov 0   ;;  %s919_s23 = smov 0  }
   0x7 LB: > { %s515_s24 = sadd.s32 4294967295, %s868_s23   ;;  %s516_s25 = sadd.s32 4294967294, %s868_s23   ;;  %s868_s23 = sphi %s919_s23, %s22_s23   ;;  %s864_s22 = sphi %s917_s22, %s1189_s22   ;;  %s860_s21 = sphi %s915_s21, %s1188_s21   ;;  %s856_s20 = sphi %s913_s20, %s1187_s20   ;;  %s852_s19 = sphi %s911_s19, %s1186_s19   ;;  %s848_s18 = sphi %s909_s18, %s1185_s18  }
   0x8   : > { %p56_p0 = scmp.ne.s32.totalorder %s852_s19, %s848_s18  ;;  %p943_p1 = scmp.eq.s32.totalorder %s515_s24, 0 }
   0x9   : > { %p947_p2 = scmp.eq.s32.totalorder %s515_s24, 1  ;;  %p170_p3 = scmp.eq.s32.totalorder %s516_s25, 1 }
   0xa   : > { %s1171_s26 = scalar_select %p943_p1, 1, 0 }
   0xb   : > { %s1172_s27 = scalar_select %p947_p2, 1, 0 }
   0xc   : > { %p953_p4 = por %p943_p1, %p56_p0  ;;  %p517_p5 = scmp.ge.s32.totalorder %s868_s23, 1 }
   0xd   : > { %p958_p6 = por %p170_p3, %p56_p0  ;;  %p177_p7 = scmp.lt.s32.totalorder %s868_s23, 3 }
   0xe   : > { %s1173_s28 = scalar_select %p953_p4, 1, 0 }
   0xf   : > { %s1174_s29 = scalar_select %p958_p6, 1, 0 }
  0x10   : > { %p963_p8 = pnand %p517_p5, %p177_p7  ;;  %s870_s6 = smov [#allocation6]  }
  0x11   : > { %s190_s7 = sshll.u32 %s870_s6, 4  ;;  %s871_s8 = smov [#allocation8]   ;;  %s191_s7 = int_to_ptr.vmem [resolvable:$true] %s190_s7 }
  0x12   : > { %s1175_s30 = scalar_select %p963_p8, 1, 0 }
  0x13   : > { %p620_p10 = pneg %p963_p8  ;;  %s203_s9 = sshll.u32 %s871_s8, 4  ;;  %s976_s9 = int_to_ptr.vmem [resolvable:$true] %s203_s9 }
  0x14   : > { %s696_s13 = scalar_lea.hbm %s1162_s1, 64 }
  0x15   : > { %p972_p11 = pnand %p620_p10, %p943_p1  ;;  %p697_p12 = scmp.ne.s32.totalorder %s1162_s1, %s696_s13 }
  0x16   : > { %p703_p5 = scmp.lt.u32.totalorder %s696_s13, %s1162_s1 }
  0x17   : > { %p698_p13 = pneg %p972_p11 }
  0x19   : > { %p699_p0 = pnand %p698_p13, %p697_p12 }
  0x1b   : > { %p700_p3 = pneg %p699_p0 }
  0x1d   : > { %p705_p7 = pnand %p703_p5, %p700_p3 }
  0x1f   : > { %708 = shalt.err (!%p705_p7)
}
  0x20   : > { %s709_s24 = scalar_lea.vmem %s191_s7, 64  ;;  %p717_p1 = scmp.lt.s32.totalorder %s191_s7, %s191_s7 }
  0x21   : > { %p710_p10 = scmp.ne.s32.totalorder %s191_s7, %s709_s24  ;;  %p718_p4 = scmp.lt.s32.totalorder %s709_s24, %s709_s24 }
  0x23   : > { %p712_p9 = pnand %p710_p10, %p698_p13  ;;  %p719_p8 = por %p718_p4, %p717_p1 }
  0x25   : > { %p713_p6 = pneg %p712_p9 }
  0x27   : > { %p720_p2 = pnand %p719_p8, %p713_p6 }
  0x29   : > { %723 = shalt.err (!%p720_p2)
}
  0x2a   : > { %623 = dma.hbm_to_vmem [thread:$0]  (!%p972_p11), %s1162_s1, 64, %s191_s7, [#allocation7]  }
  0x2b   : > { %s724_s12 = scalar_lea.hbm %s1164_s3, 2048 }
  0x2c   : > { %p725_p9 = scmp.ne.s32.totalorder %s1164_s3, %s724_s12  ;;  %p731_p2 = scmp.lt.u32.totalorder %s724_s12, %s1164_s3 }
  0x2e   : > { %p727_p1 = pnand %p725_p9, %p698_p13 }
  0x30   : > { %p728_p4 = pneg %p727_p1 }
  0x32   : > { %p733_p6 = pnand %p731_p2, %p728_p4 }
  0x34   : > { %736 = shalt.err (!%p733_p6)
}
  0x35   : > { %s737_s7 = scalar_lea.vmem %s976_s9, 2048  ;;  %p745_p3 = scmp.lt.s32.totalorder %s976_s9, %s976_s9 }
  0x36   : > { %p738_p8 = scmp.ne.s32.totalorder %s976_s9, %s737_s7  ;;  %p746_p5 = scmp.lt.s32.totalorder %s737_s7, %s737_s7 }
  0x38   : > { %p740_p12 = pnand %p738_p8, %p698_p13  ;;  %p747_p7 = por %p746_p5, %p745_p3 }
  0x3a   : > { %p741_p0 = pneg %p740_p12 }
  0x3c   : > { %p748_p10 = pnand %p747_p7, %p741_p0 }
  0x3e   : > { %751 = shalt.err (!%p748_p10)
}
  0x3f   : > { %s872_s17 = smov 128   ;;  %s873_s24 = smov 8  }
  0x40   : > { %626 = dma.hbm_to_vmem [thread:$0]  (!%p972_p11), %s1164_s3, 2048, %s976_s9, [#allocation7], %s872_s17, %s872_s17, %s873_s24  }
  0x41   : > { %s34_s8 = sadd.s32 1, %s864_s22  ;;  %s43_s11 = sadd.s32 1, %s856_s20 }
  0x42   : > { %p36_p13 = scmp.ge.s32.totalorder %s34_s8, 2  ;;  %p50_p9 = scmp.ne.s32.totalorder %s856_s20, %s852_s19 }
  0x43   : > { %p51_p1 = scmp.eq.s32.totalorder %s868_s23, 0  ;;  %p637_p4 = scmp.lt.s32.totalorder %s868_s23, 2 }
  0x44   : > { %s1191_s8 = smov (%p36_p13, %s34_s8), 0  ;;  %p1177_p6 = scmp.ne.s32.totalorder %s1172_s27, 0 }
  0x45   : > { %p52_p2 = por %p51_p1, %p50_p9  ;;  %s38_s10 = ssub.s32 %s864_s22, %s1191_s8 }
  0x46   : > { %p1035_p8 = por %p1177_p6, %p50_p9  ;;  %s220_s13 = sand.u32 1, %s856_s20  }
  0x47   : > { %p41_p12 = scmp.eq.s32.totalorder %s38_s10, 0  ;;  %s521_s9 = sshll.u32 %s220_s13, 3 }
  0x48   : > { %s531_s14 = sshll.u32 %s864_s22, 7  ;;  %s224_s27 = scalar_lea.vmem [#allocation3], %s521_s9 }
  0x49   : > { %s1044_s15 = scalar_select %p41_p12, %s856_s20, %s43_s11  }
  0x4a   : > { %s1049_s17 = scalar_lea.hbm %s1161_s0, %s531_s14  ;;  %s234_s24 = sshll.u32 %s224_s27, 4  ;;  %s1057_s24 = int_to_ptr.vmem [resolvable:$true] %s234_s24 }
  0x4b   : > { %p1053_p11 = pnand %p637_p4, %p52_p2  ;;  %s221_s6 = scalar_lea.sflag [#allocation4], %s220_s13 }
  0x4c   : > { %s752_s11 = scalar_lea.hbm %s1049_s17, 128  ;;  %s757_s14 = scalar_lea.hbm %s1161_s0, 256 }
  0x4d   : > { %p753_p0 = scmp.ne.s32.totalorder %s1049_s17, %s752_s11  ;;  %p754_p3 = pneg %p1053_p11 }
  0x4e   : > { %p758_p10 = scmp.lt.u32.totalorder %s1049_s17, %s1161_s0  ;;  %p759_p13 = scmp.lt.u32.totalorder %s757_s14, %s752_s11 }
  0x4f   : > { %p755_p5 = pnand %p754_p3, %p753_p0  ;;  %p761_p1 = scmp.lt.u32.totalorder %s752_s11, %s1049_s17 }
  0x50   : > { %p760_p9 = por %p759_p13, %p758_p10 }
  0x51   : > { %p756_p7 = pneg %p755_p5 }
  0x52   : > { %p762_p4 = por %p761_p1, %p760_p9 }
  0x54   : > { %p763_p2 = pnand %p762_p4, %p756_p7 }
  0x56   : > { %766 = shalt.err (!%p763_p2)
}
  0x57   : > { %s767_s13 = scalar_lea.vmem %s1057_s24, 128  ;;  %s874_s27 = smov [#allocation3]  }
  0x58   : > { %p768_p6 = scmp.ne.s32.totalorder %s1057_s24, %s767_s13  ;;  %s772_s10 = sshll.u32 %s874_s27, 4  ;;  %s773_s10 = int_to_ptr.vmem [resolvable:$false] %s772_s10 }
  0x59   : > { %s774_s9 = scalar_lea.vmem %s773_s10, 256  ;;  %p775_p5 = scmp.lt.s32.totalorder %s1057_s24, %s773_s10 }
  0x5a   : > { %p770_p12 = pnand %p768_p6, %p754_p3  ;;  %p776_p10 = scmp.lt.s32.totalorder %s774_s9, %s767_s13 }
  0x5c   : > { %p771_p0 = pneg %p770_p12  ;;  %p777_p13 = por %p776_p10, %p775_p5 }
  0x5e   : > { %p778_p9 = pnand %p777_p13, %p771_p0 }
  0x60   : > { %781 = shalt.err (!%p778_p9)
}
  0x61   : > { %630 = dma.hbm_to_vmem [thread:$0]  (!%p1053_p11), %s1049_s17, 128, %s1057_s24, %s221_s6  }
  0x62   : > { %p1180_p7 = scmp.ne.s32.totalorder %s1175_s30, 0 }
  0x63   : > { %s1087_s11 = sand.u32 (!%p1180_p7), 1, %s852_s19   ;;  %p1181_p3 = scmp.ne.s32.totalorder (!%p1180_p7), %s1173_s28, 0 }
  0x64   : > { %243 = sbr.rel (%p1180_p7) target bundleno = 522 (0x20a), region = 40  ;;  %s525_s14 = sshll.u32 (!%p1180_p7), %s1087_s11, 3 }
  0x65   : > { %s246_s16 = scalar_lea.sflag (!%p1180_p7), [#allocation4], %s1087_s11  ;;  %s249_s7 = scalar_lea.vmem (!%p1180_p7), [#allocation3], %s525_s14 }
  0x6b   : > { %835 = dma.done.wait (%p1181_p3), %s246_s16, 128  }
  0x6c   : > { %837 = vsyncadd (%p1181_p3), %s246_s16, 4294967168  ;;  %p1182_p1 = scmp.ne.s32.totalorder %s1171_s26, 0 }
  0x6e   : > { %839 = dma.done.wait (%p1182_p1), [#allocation7], 2112  }
  0x6f   : > { %841 = vsyncadd (%p1182_p1), [#allocation7], 4294965184  ;;  %v875_v0 = vmov 0.0   ;;  %v876_v1 = vmov 0.0|0.0   ;;  %v289_v2 = vld [vmem:[%s249_s7] sm:$0xff]  ;;  %v318_v3 = vld [vmem:[#allocation8] sm:$0xff] }
  0x70   : > { %288 = vst [vmem:[#allocation2] sm:$0xf] %v875_v0  ;;  %584 = vmatprep.subr.bf16.mxu0 %v876_v1  ;;  %v319_v4 = vld [vmem:[#allocation8 + $0x8] sm:$0xff]  ;;  %v291_v5 = vrot.slane %v289_v2, 4  ;;  %v320_v7 = vld [vmem:[#allocation8 + $0x10] sm:$0xff]  ;;  %v321_v8 = vld [vmem:[#allocation8 + $0x18] sm:$0xff] }
  0x71   : > { %v585_v6 = vpack.c.bf16 %v319_v4, %v318_v3  ;;  %v588_v11 = vpack.c.bf16 %v321_v8, %v320_v7  ;;  %v322_v12 = vld [vmem:[#allocation8 + $0x20] sm:$0xff]  ;;  %v323_v13 = vld [vmem:[#allocation8 + $0x28] sm:$0xff]  ;;  %vm301_vm0 = vcmask 1043456   ;;  %v324_v18 = vld [vmem:[#allocation8 + $0x30] sm:$0xff]  ;;  %vm877_vm1 = vmmov 0   ;;  %s528_s24 = sshll.u32 %s860_s21, 4 }
  0x72   : > { %v293_v10 = vadd.f32 %v291_v5, %v289_v2  ;;  %v591_v15 = vpack.c.bf16 %v323_v13, %v322_v12  ;;  %v325_v19 = vld [vmem:[#allocation8 + $0x38] sm:$0xff]  ;;  %v326_v21 = vld [vmem:[#allocation8 + $0x40] sm:$0xff]  ;;  %v327_v22 = vld [vmem:[#allocation8 + $0x48] sm:$0xff]  ;;  %581 = vmatprep.mubr.msk.f32.mxu0 %vm877_vm1, %v875_v0  ;;  %s282_s25 = scalar_lea.vmem [#allocation9], %s1087_s11  ;;  %s1112_s10 = scalar_lea.hbm %s1166_s5, %s528_s24 }
  0x73   : > { %586 = vmatpush3.bf16.msra.mxu0 %v585_v6  ;;  %v594_v20 = vpack.c.bf16 %v325_v19, %v324_v18  ;;  %v597_v23 = vpack.c.bf16 %v327_v22, %v326_v21  ;;  %v328_v24 = vld [vmem:[#allocation8 + $0x50] sm:$0xff]  ;;  %v329_v25 = vld [vmem:[#allocation8 + $0x58] sm:$0xff]  ;;  %v330_v27 = vld [vmem:[#allocation8 + $0x60] sm:$0xff]  ;;  %s419_s6 = sshll.u32 %s282_s25, 4  ;;  %s407_s9 = scalar_lea.sflag [#allocation5], %s1087_s11  ;;  %s1114_s6 = int_to_ptr.vmem [resolvable:$true] %s419_s6 }
  0x74   : > { %587 = vmatprep.subr.bf16.mxu0 %v876_v1  ;;  %v600_v26 = vpack.c.bf16 %v329_v25, %v328_v24  ;;  %v331_v28 = vld [vmem:[#allocation8 + $0x68] sm:$0xff]  ;;  %v332_v29 = vld [vmem:[#allocation8 + $0x70] sm:$0xff]  ;;  %v333_v31 = vld [vmem:[#allocation8 + $0x78] sm:$0xff]  ;;  %s782_s14 = scalar_lea.vmem %s1114_s6, 16  ;;  %s878_s21 = smov [#allocation9]  }
  0x75   : > { %v603_v30 = vpack.c.bf16 %v331_v28, %v330_v27  ;;  %v606_v32 = vpack.c.bf16 %v333_v31, %v332_v29  ;;  %v306_v34 = vld [vmem:[#allocation6] sm:$0xf]  ;;  %v315_v43 = vld [vmem:[%s1163_s2] sm:$0x1]  ;;  %p783_p11 = scmp.ne.s32.totalorder %s1114_s6, %s782_s14  ;;  %s786_s16 = sshll.u32 %s878_s21, 4  ;;  %s787_s16 = int_to_ptr.vmem [resolvable:$false] %s786_s16 }
  0x76   : > { %v334_v47 = vld [vmem:[%s1165_s4] sm:$0x1]  ;;  %s788_s7 = scalar_lea.vmem %s787_s16, 32  ;;  %p789_p6 = scmp.lt.s32.totalorder %s1114_s6, %s787_s16 }
  0x77   : > { %v294_v9 = vld [vmem:[#allocation2] sm:$0xf]  ;;  %589 = vmatpush3.bf16.msra.mxu0 %v588_v11  ;;  %p784_p4 = pnand %p783_p11, %p1035_p8  ;;  %p790_p12 = scmp.lt.s32.totalorder %s788_s7, %s782_s14 }
  0x78   : > { %v295_v14 = vadd.f32 %v294_v9, %v293_v10  ;;  %590 = vmatprep.subr.bf16.mxu0 %v876_v1 }
  0x79   : > { %p785_p2 = pneg %p784_p4  ;;  %p791_p0 = por %p790_p12, %p789_p6 }
  0x7a   : > { %296 = vst [vmem:[#allocation2] sm:$0xf] %v295_v14 }
  0x7b   : > { %592 = vmatpush3.bf16.msra.mxu0 %v591_v15  ;;  %p792_p5 = pnand %p791_p0, %p785_p2 }
  0x7c   : > { %593 = vmatprep.subr.bf16.mxu0 %v876_v1 }
  0x7f   : > { %595 = vmatpush3.bf16.msra.mxu0 %v594_v20 }
  0x80   : > { %596 = vmatprep.subr.bf16.mxu0 %v876_v1 }
  0x81   : > { %v300_v16 = vld [vmem:[#allocation2] sm:$0xf] }
  0x82   : > { %v302_v17 = vsel %vm301_vm0, %v300_v16, 0.0 }
  0x83   : > { %303 = vadd.xlane.f32.xlu0 %v302_v17  ;;  %598 = vmatpush3.bf16.msra.mxu0 %v597_v23 }
  0x84   : > { %599 = vmatprep.subr.bf16.mxu0 %v876_v1 }
  0x87   : > { %601 = vmatpush3.bf16.msra.mxu0 %v600_v26 }
  0x88   : > { %602 = vmatprep.subr.bf16.mxu0 %v876_v1 }
  0x8b   : > { %604 = vmatpush3.bf16.msra.mxu0 %v603_v30 }
  0x8c   : > { %605 = vmatprep.subr.bf16.mxu0 %v876_v1 }
  0x8f   : > { %607 = vmatpush3.bf16.msra.mxu0 %v606_v32 }
 0x110   : > { %v304_v33 = vpop.xlane.xlu0 %303 }
 0x111   : > { %v305_v35 = vmul.f32 0.00390625, %v304_v33 }
 0x113   : > { %v307_v36 = vmul.f32 %v306_v34, %v305_v35 }
 0x115   : > { %v308_v37 = vsel %vm301_vm0, %v307_v36, 0.0 }
 0x116   : > { %v309_v38 = vrot.slane %v308_v37, 4 }
 0x118   : > { %v310_v39 = vadd.f32 %v309_v38, %v308_v37 }
 0x11a   : > { %v311_v40 = vrot.slane %v310_v39, 2 }
 0x11c   : > { %v312_v41 = vadd.f32 %v311_v40, %v310_v39 }
 0x11e   : > { %v313_v42 = vrot.slane %v312_v41, 1 }
 0x120   : > { %v314_v44 = vadd.f32 %v313_v42, %v312_v41 }
 0x122   : > { %v316_v45 = vadd.f32 %v315_v43, %v314_v44 }
 0x124   : > { %v317_v46 = vmax.f32 %v316_v45, 0.0 }
 0x126   : > { %582 = vmatmul.mubr.f32.vlgmr.msra.gmra.mrb[0].mxu0 %v317_v46 }
 0x1f9   : > { %v401_v48 = vpop.f32.mrb[0].mxu0 }
 0x1fa   : > { %v402_v49 = vadd.f32 %v401_v48, %v334_v47  ;;  %v583_v50 = vpop.f32.mrb[1].mxu0 }
 0x1fc   : > { %405 = vst [vmem:[%s282_s25] sm:$0x1] %v402_v49 }
 0x1fd   : > { %795 = shalt.err (!%p792_p5)
}
 0x1fe   : > { %s796_s11 = scalar_lea.hbm %s1112_s10, 16  ;;  %s800_s30 = scalar_lea.hbm %s1166_s5, 32 }
 0x1ff   : > { %p797_p10 = scmp.ne.s32.totalorder %s1112_s10, %s796_s11  ;;  %p801_p7 = scmp.lt.u32.totalorder %s1112_s10, %s1166_s5 }
 0x200   : > { %p802_p3 = scmp.lt.u32.totalorder %s800_s30, %s796_s11  ;;  %p804_p11 = scmp.lt.u32.totalorder %s796_s11, %s1112_s10 }
 0x201   : > { %p798_p13 = pnand %p797_p10, %p1035_p8 }
 0x202   : > { %p803_p1 = por %p802_p3, %p801_p7 }
 0x203   : > { %p799_p9 = pneg %p798_p13 }
 0x204   : > { %p805_p4 = por %p804_p11, %p803_p1 }
 0x206   : > { %p806_p2 = pnand %p805_p4, %p799_p9 }
 0x208   : > { %809 = shalt.err (!%p806_p2)
}
 0x209   : > { %618 = dma.vmem_to_hbm [thread:$0]  (%p1035_p8), %s1114_s6, 16, %s1112_s10, %s407_s9  }
 0x20a PF: > { %s431_s25 = sand.u32 1, %s848_s18   ;;  %p1183_p6 = scmp.ne.s32.totalorder %s1174_s29, 0 }
 0x20b   : > { %p1184_p12 = scmp.ge.s32.totalorder %s868_s23, 2  ;;  %s432_s13 = scalar_lea.sflag [#allocation5], %s431_s25 }
 0x20d   : > { %p632_p0 = pnand %p1184_p12, %p1183_p6 }
 0x20f   : > { %843 = dma.done.wait (!%p632_p0), %s432_s13, 16  }
 0x210   : > { %845 = vsyncadd (!%p632_p0), %s432_s13, 4294967280  ;;  %s22_s23 = sadd.s32 1, %s868_s23   ;;  %s1185_s18 = smov %s852_s19 }
 0x211   : > { %p19_p5 = scmp.ge.s32.totalorder %s22_s23, 4   ;;  %s1186_s19 = smov %s856_s20 }
 0x212   : > { %s1187_s20 = smov %s1044_s15  ;;  %s1188_s21 = smov %s864_s22 }
 0x213   : > { %s1189_s22 = smov %s1191_s8  ;;  %21 = sbr.rel (!%p19_p5) target bundleno = 7 (0x7), region = 101 }
 0x21a   :  { %436 = vsyncpa [#allocation4], 1 }
 0x21b   :  { %438 = vsyncpa [#allocation4 + $0x1], 1 }
 0x21c   :  { %439 = vsyncpa [#allocation7], 1 }
 0x21d   :  { %440 = vsyncpa [#allocation5], 1 }
 0x21e   :  { %442 = vsyncpa [#allocation5 + $0x1], 1 }

</bundles_post_ra>
